<compile_context>
chip_gen: v5e
topology: v5e:2x2
jax: 0.10.0
libtpu: 0.0.40
codegen_flags: <defaults>
</compile_context>

<pallas_src>
import jax
import jax.numpy as jnp
import numpy as np
from jax.experimental import pallas as pl
from jax.experimental.pallas import tpu as pltpu

N_CLASSES = 4
SMOOTH = 1e-5


def _cross_adjacency(H, W):
    """(HW, HW) f32 matrix A with A[q, p] = 1 iff p == q or p is an
    up/down/left/right neighbor of q (zero padding at image borders).
    Symmetric, so (onehot @ A)[i, p] = 3x3-cross conv of onehot[i] at p."""
    HW = H * W
    idx = np.arange(HW)
    r = idx // W
    c = idx % W
    dr = np.abs(r[:, None] - r[None, :])
    dc = np.abs(c[:, None] - c[None, :])
    adj = ((dr == 0) & (dc == 0)) | ((dr == 0) & (dc == 1)) | ((dr == 1) & (dc == 0))
    return jnp.asarray(adj.astype(np.float32))


def _boundary_dou_stats_kernel(adj_ref, x_ref, t_ref, stats_ref):
    # adj_ref:   (HW, HW) f32   cross-adjacency (+identity) matrix
    # x_ref:     (1, C, HW) f32 logits for one batch element (lane-dense)
    # t_ref:     (1, 1, HW) i32 labels for one batch element
    # stats_ref: (1, C, 4)  f32 per-class partials [c_cnt, ti_sum, intersect, z_sum]
    x = x_ref[0]                 # (C, HW)
    t = t_ref[0]                 # (1, HW)
    C, HW = x.shape

    # softmax over the class (sublane) axis, f32 accumulation
    m = jnp.max(x, axis=0, keepdims=True)
    e = jnp.exp(x - m)
    probs = e / jnp.sum(e, axis=0, keepdims=True)            # (C, HW)

    # one-hot encode all classes at once: onehot[i, p] = (t[p] == i)
    class_ids = jax.lax.broadcasted_iota(jnp.int32, (C, HW), 0)
    onehot = (class_ids == t).astype(jnp.float32)             # (C, HW)

    # 3x3 cross conv (padding=1) for all classes in one MXU matmul
    nb = jnp.dot(onehot, adj_ref[...], preferred_element_type=jnp.float32)  # (C, HW)

    y = nb * onehot
    y = jnp.where(y == 5.0, 0.0, y)                           # drop interior pixels
    ynz = (y != 0.0).astype(jnp.float32)

    # per-class partial sums over this batch element (lane-axis reductions)
    c_cnt = jnp.sum(ynz, axis=-1, keepdims=True)              # (C, 1) boundary count
    ti_sum = jnp.sum(onehot, axis=-1, keepdims=True)          # (C, 1) == S == y_sum
    intersect = jnp.sum(probs * onehot, axis=-1, keepdims=True)
    z_sum = jnp.sum(probs * probs, axis=-1, keepdims=True)

    stats_ref[0] = jnp.concatenate([c_cnt, ti_sum, intersect, z_sum], axis=-1)


def boundary_dou_loss(inputs, target):
    """inputs: (B, C, H, W) f32 logits; target: (B, H, W) int labels."""
    B, C, H, W = inputs.shape
    assert C == N_CLASSES
    HW = H * W
    assert HW % 128 == 0, "flattened spatial dim must be a multiple of 128"

    x = inputs.astype(jnp.float32).reshape(B, C, HW)          # lane-dense logits
    t = target.astype(jnp.int32).reshape(B, 1, HW)            # lane-dense labels
    adj = _cross_adjacency(H, W)                              # (HW, HW), resident

    stats = pl.pallas_call(
        _boundary_dou_stats_kernel,
        out_shape=jax.ShapeDtypeStruct((B, C, 4), jnp.float32),
        grid_spec=pltpu.PrefetchScalarGridSpec(
            num_scalar_prefetch=0,
            grid=(B,),
            in_specs=[
                pl.BlockSpec((HW, HW), lambda b: (0, 0)),      # adjacency (revisited)
                pl.BlockSpec((1, C, HW), lambda b: (b, 0, 0)),  # logits block
                pl.BlockSpec((1, 1, HW), lambda b: (b, 0, 0)),  # labels block
            ],
            out_specs=pl.BlockSpec((1, C, 4), lambda b: (b, 0, 0)),
        ),
        compiler_params=pltpu.CompilerParams(
            dimension_semantics=("parallel",),
        ),
    )(adj, x, t)

    # Combine per-batch partials (all four stats are plain sums over the batch)
    # and finish the per-class DoU loss with the tiny scalar tail in the wrapper.
    c_cnt = jnp.sum(stats[..., 0], axis=0)       # (C,)
    s_cnt = jnp.sum(stats[..., 1], axis=0)       # (C,)  == y_sum (one-hot mask)
    intersect = jnp.sum(stats[..., 2], axis=0)   # (C,)
    z_sum = jnp.sum(stats[..., 3], axis=0)       # (C,)
    y_sum = s_cnt

    alpha = 1.0 - (c_cnt + SMOOTH) / (s_cnt + SMOOTH)
    alpha = jnp.minimum(2.0 * alpha - 1.0, 0.8)
    loss_per_class = (z_sum + y_sum - 2.0 * intersect + SMOOTH) / (
        z_sum + y_sum - (1.0 + alpha) * intersect + SMOOTH
    )
    return jnp.mean(loss_per_class)


# ---------- pure-JAX reference (mirrors the PyTorch module exactly) ----------
def _reference_loss(inputs, target):
    probs = jax.nn.softmax(inputs, axis=1)
    B, C, H, W = inputs.shape
    total = 0.0
    for i in range(C):
        score = probs[:, i]
        ti = (target == i).astype(jnp.float32)
        pad = jnp.pad(ti, ((0, 0), (1, 1), (1, 1)))
        nb = (
            pad[:, :-2, 1:-1]
            + pad[:, 2:, 1:-1]
            + pad[:, 1:-1, :-2]
            + pad[:, 1:-1, 2:]
            + ti
        )
        y = nb * ti
        y = jnp.where(y == 5.0, 0.0, y)
        c_cnt = jnp.count_nonzero(y).astype(jnp.float32)
        s_cnt = jnp.count_nonzero(ti).astype(jnp.float32)
        alpha = 1.0 - (c_cnt + SMOOTH) / (s_cnt + SMOOTH)
        alpha = jnp.minimum(2.0 * alpha - 1.0, 0.8)
        intersect = jnp.sum(score * ti)
        y_sum = jnp.sum(ti * ti)
        z_sum = jnp.sum(score * score)
        total = total + (z_sum + y_sum - 2.0 * intersect + SMOOTH) / (
            z_sum + y_sum - (1.0 + alpha) * intersect + SMOOTH
        )
    return total / C


if __name__ == "__main__":
    key = jax.random.PRNGKey(0)
    k1, k2 = jax.random.split(key)
    B, C, H, W = 2, N_CLASSES, 16, 16
    logits = jax.random.normal(k1, (B, C, H, W), dtype=jnp.float32)
    labels = jax.random.randint(k2, (B, H, W), 0, N_CLASSES, dtype=jnp.int32)

    loss = boundary_dou_loss(logits, labels)
    jax.block_until_ready(loss)

    ref = _reference_loss(logits, labels)
    assert np.allclose(np.asarray(loss), np.asarray(ref), rtol=1e-4, atol=1e-5), (
        float(loss),
        float(ref),
    )
    print("KERNEL_OK")
</pallas_src>

<mosaic_0001>
module attributes {stable_mosaic.version = 11 : i64} {
  func.func @_boundary_dou_stats_kernel(%arg0: i32, %arg1: memref<256x256xf32, #tpu.memory_space<vmem>>, %arg2: memref<1x4x256xf32, #tpu.memory_space<vmem>>, %arg3: memref<1x1x256xi32, #tpu.memory_space<vmem>>, %arg4: memref<1x4x4xf32, #tpu.memory_space<vmem>>) attributes {dimension_semantics = [#tpu.dimension_semantics<parallel>], iteration_bounds = array<i64: 2>, scalar_prefetch = 0 : i64, scratch_operands = 0 : i64, tpu.core_type = #tpu.core_type<tc>, window_params = [{pipeline_mode = #tpu.pipeline_mode<synchronous>, transform_indices = @transform_0, window_bounds = array<i64: 256, 256>}, {transform_indices = @transform_1, window_bounds = array<i64: 1, 4, 256>}, {transform_indices = @transform_2, window_bounds = array<i64: 1, 1, 256>}, {transform_indices = @transform_3, window_bounds = array<i64: 1, 4, 4>}]} {
    %c0 = arith.constant 0 : index
    %c0_0 = arith.constant 0 : index
    %c0_1 = arith.constant 0 : index
    %0 = vector.load %arg2[%c0, %c0_0, %c0_1] : memref<1x4x256xf32, #tpu.memory_space<vmem>>, vector<1x4x256xf32>
    %1 = vector.shape_cast %0 : vector<1x4x256xf32> to vector<4x256xf32>
    %c0_2 = arith.constant 0 : index
    %c0_3 = arith.constant 0 : index
    %c0_4 = arith.constant 0 : index
    %2 = vector.load %arg3[%c0_2, %c0_3, %c0_4] : memref<1x1x256xi32, #tpu.memory_space<vmem>>, vector<1x1x256xi32>
    %3 = vector.shape_cast %2 : vector<1x1x256xi32> to vector<1x256xi32>
    %cst = arith.constant dense<0xFF800000> : vector<256xf32>
    %4 = vector.multi_reduction <maximumf>, %1, %cst [0] : vector<4x256xf32> to vector<256xf32>
    %5 = vector.shape_cast %4 : vector<256xf32> to vector<1x256xf32>
    %6 = vector.broadcast %5 : vector<1x256xf32> to vector<4x256xf32>
    %7 = arith.subf %1, %6 : vector<4x256xf32>
    %8 = math.exp %7 : vector<4x256xf32>
    %cst_5 = arith.constant dense<0.000000e+00> : vector<256xf32>
    %9 = vector.multi_reduction <add>, %8, %cst_5 [0] : vector<4x256xf32> to vector<256xf32>
    %10 = vector.shape_cast %9 : vector<256xf32> to vector<1x256xf32>
    %11 = vector.broadcast %10 : vector<1x256xf32> to vector<4x256xf32>
    %12 = arith.divf %8, %11 : vector<4x256xf32>
    %13 = tpu.iota {dimensions = array<i32: 0>} : vector<4x256xi32>
    %14 = vector.broadcast %3 : vector<1x256xi32> to vector<4x256xi32>
    %15 = arith.cmpi eq, %13, %14 : vector<4x256xi32>
    %16 = arith.extui %15 : vector<4x256xi1> to vector<4x256xi32>
    %17 = arith.sitofp %16 : vector<4x256xi32> to vector<4x256xf32>
    %c0_6 = arith.constant 0 : index
    %c0_7 = arith.constant 0 : index
    %18 = vector.load %arg1[%c0_6, %c0_7] : memref<256x256xf32, #tpu.memory_space<vmem>>, vector<256x256xf32>
    %cst_8 = arith.constant dense<0.000000e+00> : vector<4x256xf32>
    %19 = tpu.matmul %17, %18, %cst_8 {dimension_numbers = #tpu.dot_dimension_numbers<[1], [0], [0], [1], [0, 0, 1, 1], [], []>} : vector<4x256xf32>, vector<256x256xf32>, vector<4x256xf32> -> vector<4x256xf32>
    %20 = arith.mulf %19, %17 : vector<4x256xf32>
    %cst_9 = arith.constant 5.000000e+00 : f32
    %21 = vector.broadcast %cst_9 : f32 to vector<4x256xf32>
    %22 = arith.cmpf oeq, %20, %21 : vector<4x256xf32>
    %cst_10 = arith.constant 0.000000e+00 : f32
    %23 = vector.broadcast %cst_10 : f32 to vector<4x256xf32>
    %24 = arith.select %22, %23, %20 : vector<4x256xi1>, vector<4x256xf32>
    %cst_11 = arith.constant 0.000000e+00 : f32
    %25 = vector.broadcast %cst_11 : f32 to vector<4x256xf32>
    %26 = arith.cmpf one, %24, %25 : vector<4x256xf32>
    %27 = arith.extui %26 : vector<4x256xi1> to vector<4x256xi32>
    %28 = arith.sitofp %27 : vector<4x256xi32> to vector<4x256xf32>
    %cst_12 = arith.constant dense<0.000000e+00> : vector<4xf32>
    %29 = vector.multi_reduction <add>, %28, %cst_12 [1] : vector<4x256xf32> to vector<4xf32>
    %30 = vector.shape_cast %29 : vector<4xf32> to vector<4x1xf32>
    %cst_13 = arith.constant dense<0.000000e+00> : vector<4xf32>
    %31 = vector.multi_reduction <add>, %17, %cst_13 [1] : vector<4x256xf32> to vector<4xf32>
    %32 = vector.shape_cast %31 : vector<4xf32> to vector<4x1xf32>
    %33 = arith.mulf %12, %17 : vector<4x256xf32>
    %cst_14 = arith.constant dense<0.000000e+00> : vector<4xf32>
    %34 = vector.multi_reduction <add>, %33, %cst_14 [1] : vector<4x256xf32> to vector<4xf32>
    %35 = vector.shape_cast %34 : vector<4xf32> to vector<4x1xf32>
    %36 = arith.mulf %12, %12 : vector<4x256xf32>
    %cst_15 = arith.constant dense<0.000000e+00> : vector<4xf32>
    %37 = vector.multi_reduction <add>, %36, %cst_15 [1] : vector<4x256xf32> to vector<4xf32>
    %38 = vector.shape_cast %37 : vector<4xf32> to vector<4x1xf32>
    %39 = tpu.concatenate %30, %32, %35, %38 in 1 : vector<4x1xf32>, vector<4x1xf32>, vector<4x1xf32>, vector<4x1xf32> -> vector<4x4xf32>
    %c0_16 = arith.constant 0 : index
    %c0_17 = arith.constant 0 : index
    %c0_18 = arith.constant 0 : index
    %40 = vector.load %arg4[%c0_16, %c0_17, %c0_18] : memref<1x4x4xf32, #tpu.memory_space<vmem>>, vector<1x4x4xf32>
    %41 = vector.shape_cast %40 : vector<1x4x4xf32> to vector<4x4xf32>
    %42 = vector.shape_cast %39 : vector<4x4xf32> to vector<1x4x4xf32>
    tpu.vector_store %arg4[%c0_16, %c0_17, %c0_18], %42 {strides = array<i32>} : memref<1x4x4xf32, #tpu.memory_space<vmem>>, vector<1x4x4xf32>,
    return
  }
  func.func @transform_0(%arg0: i32) -> (i32, i32) {
    %c0_i32 = arith.constant 0 : i32
    %c0_i32_0 = arith.constant 0 : i32
    %c0_i32_1 = arith.constant 0 : i32
    return %c0_i32, %c0_i32_0 : i32, i32
  }
  func.func @transform_1(%arg0: i32) -> (i32, i32, i32) {
    %c0_i32 = arith.constant 0 : i32
    %c0_i32_0 = arith.constant 0 : i32
    %c0_i32_1 = arith.constant 0 : i32
    return %arg0, %c0_i32, %c0_i32_0 : i32, i32, i32
  }
  func.func @transform_2(%arg0: i32) -> (i32, i32, i32) {
    %c0_i32 = arith.constant 0 : i32
    %c0_i32_0 = arith.constant 0 : i32
    %c0_i32_1 = arith.constant 0 : i32
    return %arg0, %c0_i32, %c0_i32_0 : i32, i32, i32
  }
  func.func @transform_3(%arg0: i32) -> (i32, i32, i32) {
    %c0_i32 = arith.constant 0 : i32
    %c0_i32_0 = arith.constant 0 : i32
    %c0_i32_1 = arith.constant 0 : i32
    return %arg0, %c0_i32, %c0_i32_0 : i32, i32, i32
  }
}

</mosaic_0001>

<bundles_post_ra>
// kernel: tpu_custom_call.1
= control target key start
LH: loop header
LB: loop body
LE: loop exit
PB: predicated region body
PF: predicated region fallthrough
CT: control target
= control target key end

     0   :  { %s1150_s0 = inlined_call_operand.hbm [shape: f32[256,256], index: 0, kind: input, shape index: {}]   ;;  %s1151_s1 = inlined_call_operand.hbm [shape: f32[2,4,256], index: 1, kind: input, shape index: {}]   ;;  %s1152_s2 = inlined_call_operand.hbm [shape: s32[2,1,256], index: 2, kind: input, shape index: {}]   ;;  %s1153_s3 = inlined_call_operand.hbm [shape: f32[2,4,4], index: 3, kind: output, shape index: {}]  }
   0x1   :  { %1154 = sst [smem:[#allocation12_spill]] %s1150_s0 }
   0x2   :  { %1155 = sst [smem:[#allocation13_spill]] %s1151_s1 }
   0x3   :  { %8 = vsyncpa [#allocation3], 0 }
   0x4   :  { %9 = vsyncpa [#allocation6], 0 }
   0x5   :  { %11 = vsyncpa [#allocation6 + $0x1], 0 }
   0x6   :  { %12 = vsyncpa [#allocation4], 0 }
   0x7   :  { %14 = vsyncpa [#allocation4 + $0x1], 0  ;;  %s928_s12 = smov 0   ;;  %s930_s13 = smov 0  }
   0x8   :  { %s932_s14 = smov 0   ;;  %s934_s15 = smov 0  }
   0x9 LB: > { %s949_s16 = sadd.s32 4294967295, %s901_s15   ;;  %s644_s17 = sadd.s32 4294967294, %s901_s15   ;;  %s901_s15 = sphi %s934_s15, %s1173_s15   ;;  %s897_s14 = sphi %s932_s14, %s1172_s14   ;;  %s893_s13 = sphi %s930_s13, %s1171_s13   ;;  %s889_s12 = sphi %s928_s12, %s1170_s12  }
   0xa   : > { %s953_s18 = sadd.s32 1, %s901_s15   ;;  %s48_s19 = sadd.s32 1, %s897_s14 }
   0xb   : > { %s45_s20 = ssub.s32 %s901_s15, %s953_s18  ;;  %p55_p0 = scmp.ne.s32.totalorder %s897_s14, %s893_s13 }
   0xc   : > { %p46_p1 = scmp.eq.s32.totalorder %s45_s20, 0  ;;  %p56_p2 = scmp.eq.s32.totalorder %s901_s15, 0 }
   0xd   : > { %p61_p3 = scmp.ne.s32.totalorder %s893_s13, %s889_s12  ;;  %p111_p4 = scmp.eq.s32.totalorder %s949_s16, 1 }
   0xe   : > { %s965_s21 = scalar_select %p46_p1, %s897_s14, %s48_s19  }
   0xf   : > { %p967_p5 = por %p56_p2, %p55_p0  ;;  %p971_p6 = por %p111_p4, %p55_p0 }
  0x10   : > { %p117_p7 = scmp.eq.s32.totalorder %s644_s17, 1  ;;  %p697_p9 = scmp.lt.s32.totalorder %s901_s15, 2 }
  0x11   : > { %s151_s25 = sand.u32 1, %s901_s15   ;;  %s153_s26 = sand.u32 1, %s897_s14  }
  0x12   : > { %p980_p10 = por %p117_p7, %p61_p3  ;;  %s648_s27 = sshll.u32 %s153_s26, 3 }
  0x13   : > { %s670_s28 = sshll.u32 %s901_s15, 3  ;;  %s1159_s1 = sld [smem:[#allocation13_spill]] }
  0x14   : > { %s155_s6 = scalar_lea.vmem [#allocation5], %s648_s27  ;;  %p992_p11 = pnand %p697_p9, %p967_p5 }
  0x15   : > { %s164_s7 = sshll.u32 %s155_s6, 4  ;;  %s996_s9 = sshll.u32 %s153_s26, 1  ;;  %s165_s7 = int_to_ptr.vmem [resolvable:$true] %s164_s7 }
  0x16   : > { %p62_p12 = scmp.eq.s32.totalorder %s949_s16, 0  ;;  %p124_p0 = scmp.lt.s32.totalorder %s901_s15, 3 }
  0x17   : > { %s1001_s10 = scalar_lea.sflag [#allocation6], %s151_s25  ;;  %p745_p2 = pneg %p992_p11 }
  0x19   : > { %s160_s4 = scalar_lea.hbm %s1159_s1, %s670_s28  ;;  %s748_s22 = scalar_lea.hbm %s1159_s1, 16 }
  0x1a   : > { %s162_s5 = sshll.u32 %s160_s4, 4  ;;  %s163_s5 = int_to_ptr.hbm [resolvable:$true] %s162_s5 }
  0x1b   : > { %s741_s11 = sshra.s32 %s163_s5, 4  ;;  %s742_s11 = int_to_ptr.hbm [resolvable:$true] %s741_s11 }
  0x1c   : > { %s743_s17 = scalar_lea.hbm %s742_s11, 8  ;;  %p749_p7 = scmp.lt.s32.totalorder %s742_s11, %s1159_s1 }
  0x1d   : > { %p744_p1 = scmp.ne.s32.totalorder %s742_s11, %s743_s17  ;;  %p750_p9 = scmp.lt.s32.totalorder %s748_s22, %s743_s17 }
  0x1f   : > { %p746_p4 = pnand %p745_p2, %p744_p1  ;;  %p751_p8 = por %p750_p9, %p749_p7 }
  0x21   : > { %p747_p5 = pneg %p746_p4 }
  0x23   : > { %p752_p13 = pnand %p751_p8, %p747_p5 }
  0x25   : > { %755 = shalt.err (!%p752_p13)
}
  0x26   : > { %688 = dma.hbm_to_vmem [thread:$0]  (!%p992_p11), %s163_s5, 128, %s165_s7, %s1001_s10  }
  0x27   : > { %p1022_p1 = por %p62_p12, %p61_p3  ;;  %p1162_p8 = scmp.ge.s32.totalorder %s901_s15, 1 }
  0x28   : > { %s1164_s0 = sld [smem:[#allocation12_spill]]  ;;  %s903_s5 = smov [#allocation2]  }
  0x29   : > { %p1030_p13 = pnand %p1162_p8, %p124_p0  ;;  %s137_s6 = sshll.u32 %s903_s5, 4  ;;  %s138_s6 = int_to_ptr.vmem [resolvable:$true] %s137_s6 }
  0x2a   : > { %s652_s7 = sshll.u32 %s901_s15, 1  ;;  %s904_s11 = smov 256  }
  0x2b   : > { %p681_p4 = pneg %p1030_p13  ;;  %s905_s17 = smov 16  }
  0x2c   : > { %s179_s22 = scalar_lea.hbm %s1152_s2, %s652_s7  ;;  %s175_s26 = scalar_lea.vmem [#allocation7], %s996_s9 }
  0x2d   : > { %p682_p3 = pnand %p681_p4, %p62_p12  ;;  %s183_s27 = sshll.u32 %s175_s26, 4  ;;  %s184_s27 = int_to_ptr.vmem [resolvable:$true] %s183_s27 }
  0x2e   : > { %s135_s4 = sshll.u32 %s1164_s0, 4  ;;  %s181_s29 = sshll.u32 %s179_s22, 4  ;;  %s136_s4 = int_to_ptr.hbm [resolvable:$true] %s135_s4  ;;  %s182_s29 = int_to_ptr.hbm [resolvable:$true] %s181_s29 }
  0x2f   : > { %684 = dma.hbm_to_vmem [thread:$0]  (!%p682_p3), %s136_s4, 8192, %s138_s6, [#allocation3], %s904_s11, %s904_s11, %s905_s17  }
  0x30   : > { %s801_s30 = sshra.s32 %s182_s29, 4  ;;  %s808_s4 = scalar_lea.hbm %s1152_s2, 4  ;;  %s802_s30 = int_to_ptr.hbm [resolvable:$true] %s801_s30 }
  0x31   : > { %s803_s5 = scalar_lea.hbm %s802_s30, 2  ;;  %p809_p9 = scmp.lt.s32.totalorder %s802_s30, %s1152_s2 }
  0x32   : > { %p804_p0 = scmp.ne.s32.totalorder %s802_s30, %s803_s5  ;;  %p810_p8 = scmp.lt.s32.totalorder %s808_s4, %s803_s5 }
  0x34   : > { %p806_p5 = pnand %p804_p0, %p745_p2  ;;  %p811_p4 = por %p810_p8, %p809_p9 }
  0x36   : > { %p807_p7 = pneg %p806_p5 }
  0x38   : > { %p812_p3 = pnand %p811_p4, %p807_p7 }
  0x3a   : > { %815 = shalt.err (!%p812_p3)
}
  0x3b   : > { %691 = dma.hbm_to_vmem [thread:$0]  (!%p992_p11), %s182_s29, 32, %s184_s27, %s1001_s10  }
  0x3c   : > { %192 = sbr.rel (%p1030_p13) target bundleno = 376 (0x178), region = 32 }
  0x41   : > { %876 = dma.done.wait (%p62_p12), [#allocation3], 8192  }
  0x42   : > { %878 = vsyncadd (%p62_p12), [#allocation3], 4294959104  ;;  %s199_s0 = sand.u32 1, %s949_s16   ;;  %s1066_s1 = sand.u32 1, %s893_s13  }
  0x43   : > { %s655_s9 = sshll.u32 %s1066_s1, 3  ;;  %s200_s8 = scalar_lea.sflag [#allocation6], %s199_s0 }
  0x44   : > { %s1069_s7 = scalar_lea.vmem [#allocation5], %s655_s9 }
  0x45   : > { %880 = dma.done.wait (%p1022_p1), %s200_s8, 160  }
  0x46   : > { %882 = vsyncadd (%p1022_p1), %s200_s8, 4294967136  ;;  %v354_v0 = vld [vmem:[#allocation2 + $0xf8] sm:$0xff]  ;;  %v352_v2 = vld [vmem:[#allocation2 + $0xe8] sm:$0xff]  ;;  %s656_s10 = sshll.u32 %s1066_s1, 1  ;;  %v313_v47 = vlaneseq  ;;  %vm250_vm0 = vcmask 1043456   ;;  %s657_s28 = sshll.u32 %s1066_s1, 2 }
  0x47   : > { %v386_v1 = vld [vmem:[#allocation2 + $0x1f8] sm:$0xff]  ;;  %427 = vmatpush.msra.mxu2 %v354_v0  ;;  %v384_v3 = vld [vmem:[#allocation2 + $0x1e8] sm:$0xff]  ;;  %v353_v6 = vld [vmem:[#allocation2 + $0xf0] sm:$0xff]  ;;  %s213_s25 = scalar_lea.vmem [#allocation7], %s656_s10  ;;  %s667_s17 = sshll.u32 %s949_s16, 2  ;;  %vm518_vm11 = vcmask 7168  }
  0x48   : > { %447 = vmatpush.msra.mxu3 %v386_v1  ;;  %v350_v4 = vld [vmem:[#allocation2 + $0xd8] sm:$0xff]  ;;  %v385_v7 = vld [vmem:[#allocation2 + $0x1f0] sm:$0xff]  ;;  %v351_v8 = vld [vmem:[#allocation2 + $0xe0] sm:$0xff]  ;;  %387 = vmatpush.msra.mxu0 %v353_v6  ;;  %v314_v57 = vshrl.u32 %v313_v47, 7  ;;  %s537_s22 = scalar_lea.hbm %s1153_s3, %s667_s17  ;;  %vm520_vm12 = vcmask 15360   ;;  %s241_s26 = scalar_lea.vmem [#allocation8], %s657_s28 }
  0x49   : > { %v382_v5 = vld [vmem:[#allocation2 + $0x1d8] sm:$0xff]  ;;  %428 = vmatpush.msra.mxu2 %v352_v2  ;;  %v383_v9 = vld [vmem:[#allocation2 + $0x1e0] sm:$0xff]  ;;  %407 = vmatpush.msra.mxu1 %v385_v7  ;;  %v348_v10 = vld [vmem:[#allocation2 + $0xc8] sm:$0xff]  ;;  %s539_s27 = sshll.u32 %s241_s26, 4  ;;  %s541_s29 = sshll.u32 %s537_s22, 4  ;;  %vm522_vm13 = vcmask 23552   ;;  %s540_s27 = int_to_ptr.vmem [resolvable:$true] %s539_s27  ;;  %s542_s29 = int_to_ptr.hbm [resolvable:$true] %s541_s29 }
  0x4a   : > { %448 = vmatpush.msra.mxu3 %v384_v3  ;;  %v380_v11 = vld [vmem:[#allocation2 + $0x1c8] sm:$0xff]  ;;  %v349_v12 = vld [vmem:[#allocation2 + $0xd0] sm:$0xff]  ;;  %388 = vmatpush.msra.mxu0 %v351_v8  ;;  %v346_v14 = vld [vmem:[#allocation2 + $0xb8] sm:$0xff]  ;;  %vm524_vm14 = vcmask 27648   ;;  %s527_s16 = scalar_lea.sflag [#allocation4], %s1066_s1  ;;  %s845_s30 = sshra.s32 %s542_s29, 4  ;;  %s846_s30 = int_to_ptr.hbm [resolvable:$true] %s845_s30 }
  0x4b   : > { %429 = vmatpush.msra.mxu2 %v350_v4  ;;  %v381_v13 = vld [vmem:[#allocation2 + $0x1d0] sm:$0xff]  ;;  %408 = vmatpush.msra.mxu1 %v383_v9  ;;  %v378_v15 = vld [vmem:[#allocation2 + $0x1b8] sm:$0xff]  ;;  %v347_v16 = vld [vmem:[#allocation2 + $0xc0] sm:$0xff]  ;;  %s847_s5 = scalar_lea.hbm %s846_s30, 4  ;;  %s851_s11 = scalar_lea.hbm %s1153_s3, 8 }
  0x4c   : > { %449 = vmatpush.msra.mxu3 %v382_v5  ;;  %v379_v17 = vld [vmem:[#allocation2 + $0x1c0] sm:$0xff]  ;;  %389 = vmatpush.msra.mxu0 %v349_v12  ;;  %v344_v18 = vld [vmem:[#allocation2 + $0xa8] sm:$0xff]  ;;  %v345_v20 = vld [vmem:[#allocation2 + $0xb0] sm:$0xff]  ;;  %v906_v12 = vmov 1.0   ;;  %p848_p11 = scmp.ne.s32.totalorder %s846_s30, %s847_s5  ;;  %p852_p1 = scmp.lt.s32.totalorder %s846_s30, %s1153_s3 }
  0x4d   : > { %430 = vmatpush.msra.mxu2 %v348_v10  ;;  %409 = vmatpush.msra.mxu1 %v381_v13  ;;  %v376_v19 = vld [vmem:[#allocation2 + $0x1a8] sm:$0xff]  ;;  %v377_v21 = vld [vmem:[#allocation2 + $0x1b0] sm:$0xff]  ;;  %v342_v22 = vld [vmem:[#allocation2 + $0x98] sm:$0xff]  ;;  %p853_p13 = scmp.lt.s32.totalorder %s851_s11, %s847_s5 }
  0x4e   : > { %450 = vmatpush.msra.mxu3 %v380_v11  ;;  %390 = vmatpush.msra.mxu0 %v347_v16  ;;  %v374_v23 = vld [vmem:[#allocation2 + $0x198] sm:$0xff]  ;;  %v343_v24 = vld [vmem:[#allocation2 + $0xa0] sm:$0xff]  ;;  %v340_v26 = vld [vmem:[#allocation2 + $0x88] sm:$0xff]  ;;  %p849_p12 = pnand %p848_p11, %p971_p6 }
  0x4f   : > { %431 = vmatpush.msra.mxu2 %v346_v14  ;;  %410 = vmatpush.msra.mxu1 %v379_v17  ;;  %v375_v25 = vld [vmem:[#allocation2 + $0x1a0] sm:$0xff]  ;;  %v372_v27 = vld [vmem:[#allocation2 + $0x188] sm:$0xff]  ;;  %v341_v28 = vld [vmem:[#allocation2 + $0x90] sm:$0xff]  ;;  %p854_p0 = por %p853_p13, %p852_p1 }
  0x50   : > { %451 = vmatpush.msra.mxu3 %v378_v15  ;;  %391 = vmatpush.msra.mxu0 %v345_v20  ;;  %v373_v29 = vld [vmem:[#allocation2 + $0x190] sm:$0xff]  ;;  %v338_v30 = vld [vmem:[#allocation2 + $0x78] sm:$0xff]  ;;  %v339_v32 = vld [vmem:[#allocation2 + $0x80] sm:$0xff]  ;;  %p850_p2 = pneg %p849_p12 }
  0x51   : > { %432 = vmatpush.msra.mxu2 %v344_v18  ;;  %411 = vmatpush.msra.mxu1 %v377_v21  ;;  %v370_v31 = vld [vmem:[#allocation2 + $0x178] sm:$0xff]  ;;  %v371_v33 = vld [vmem:[#allocation2 + $0x180] sm:$0xff]  ;;  %v336_v34 = vld [vmem:[#allocation2 + $0x68] sm:$0xff] }
  0x52   : > { %452 = vmatpush.msra.mxu3 %v376_v19  ;;  %392 = vmatpush.msra.mxu0 %v343_v24  ;;  %v368_v35 = vld [vmem:[#allocation2 + $0x168] sm:$0xff]  ;;  %v337_v36 = vld [vmem:[#allocation2 + $0x70] sm:$0xff]  ;;  %v334_v38 = vld [vmem:[#allocation2 + $0x58] sm:$0xff]  ;;  %p855_p5 = pnand %p854_p0, %p850_p2 }
  0x53   : > { %433 = vmatpush.msra.mxu2 %v342_v22  ;;  %412 = vmatpush.msra.mxu1 %v375_v25  ;;  %v369_v37 = vld [vmem:[#allocation2 + $0x170] sm:$0xff]  ;;  %v366_v39 = vld [vmem:[#allocation2 + $0x158] sm:$0xff]  ;;  %v335_v40 = vld [vmem:[#allocation2 + $0x60] sm:$0xff] }
  0x54   : > { %453 = vmatpush.msra.mxu3 %v374_v23  ;;  %393 = vmatpush.msra.mxu0 %v341_v28  ;;  %v367_v41 = vld [vmem:[#allocation2 + $0x160] sm:$0xff]  ;;  %v332_v42 = vld [vmem:[#allocation2 + $0x48] sm:$0xff]  ;;  %v333_v45 = vld [vmem:[#allocation2 + $0x50] sm:$0xff] }
  0x55   : > { %434 = vmatpush.msra.mxu2 %v340_v26  ;;  %413 = vmatpush.msra.mxu1 %v373_v29  ;;  %v364_v43 = vld [vmem:[#allocation2 + $0x148] sm:$0xff]  ;;  %v365_v46 = vld [vmem:[#allocation2 + $0x150] sm:$0xff]  ;;  %v330_v48 = vld [vmem:[#allocation2 + $0x38] sm:$0xff] }
  0x56   : > { %454 = vmatpush.msra.mxu3 %v372_v27  ;;  %394 = vmatpush.msra.mxu0 %v339_v32  ;;  %v1077_v44 = vld [vmem:[%s1069_s7] sm:$0xff]  ;;  %v362_v49 = vld [vmem:[#allocation2 + $0x138] sm:$0xff]  ;;  %v243_v50 = vld [vmem:[%s213_s25] sm:$0x3] }
  0x57   : > { %435 = vmatpush.msra.mxu2 %v338_v30  ;;  %414 = vmatpush.msra.mxu1 %v371_v33  ;;  %245 = vst [vmem:[#allocation1] ss:$2 sm:$0xff] %v1077_v44  ;;  %v331_v51 = vld [vmem:[#allocation2 + $0x40] sm:$0xff]  ;;  %v328_v53 = vld [vmem:[#allocation2 + $0x28] sm:$0xff]  ;;  %v329_v55 = vld [vmem:[#allocation2 + $0x30] sm:$0xff]  ;;  %v315_v58 = vperm.slane %v243_v50, 0 }
  0x58   : > { %455 = vmatpush.msra.mxu3 %v370_v31  ;;  %395 = vmatpush.msra.mxu0 %v337_v36  ;;  %v363_v52 = vld [vmem:[#allocation2 + $0x140] sm:$0xff]  ;;  %v360_v54 = vld [vmem:[#allocation2 + $0x128] sm:$0xff]  ;;  %v361_v56 = vld [vmem:[#allocation2 + $0x130] sm:$0xff]  ;;  %v316_v59 = vperm.slane %v243_v50, 1 }
  0x59   : > { %436 = vmatpush.msra.mxu2 %v336_v34  ;;  %415 = vmatpush.msra.mxu1 %v369_v37  ;;  %v326_v60 = vld [vmem:[#allocation2 + $0x18] sm:$0xff]  ;;  %v324_v62 = vld [vmem:[#allocation2 + $0x8] sm:$0xff]  ;;  %v327_v0 = vld [vmem:[#allocation2 + $0x20] sm:$0xff]  ;;  %vm1080_vm1 = vcmp.eq.s32.totalorder %v314_v57, %v315_v58 }
  0x5a   : > { %456 = vmatpush.msra.mxu3 %v368_v35  ;;  %396 = vmatpush.msra.mxu0 %v335_v40  ;;  %v358_v61 = vld [vmem:[#allocation2 + $0x118] sm:$0xff]  ;;  %v356_v63 = vld [vmem:[#allocation2 + $0x108] sm:$0xff]  ;;  %v359_v1 = vld [vmem:[#allocation2 + $0x120] sm:$0xff]  ;;  %vm1086_vm2 = vcmp.eq.s32.totalorder %v314_v57, %v316_v59 }
  0x5b   : > { %437 = vmatpush.msra.mxu2 %v334_v38  ;;  %416 = vmatpush.msra.mxu1 %v367_v41  ;;  %v325_v10 = vld [vmem:[#allocation2 + $0x10] sm:$0xff]  ;;  %v323_v15 = vld [vmem:[#allocation2] sm:$0xff] }
  0x5c   : > { %457 = vmatpush.msra.mxu3 %v366_v39  ;;  %397 = vmatpush.msra.mxu0 %v333_v45  ;;  %v357_v11 = vld [vmem:[#allocation2 + $0x110] sm:$0xff]  ;;  %v355_v16 = vld [vmem:[#allocation2 + $0x100] sm:$0xff] }
  0x5d   : > { %438 = vmatpush.msra.mxu2 %v332_v42  ;;  %417 = vmatpush.msra.mxu1 %v365_v46 }
  0x5e   : > { %458 = vmatpush.msra.mxu3 %v364_v43  ;;  %398 = vmatpush.msra.mxu0 %v331_v51  ;;  %v246_v2 = vld.sshfl [vmem:[#allocation1] sm:$0xff pattern:$0x75316420]  ;;  %v247_v3 = vld.sshfl [vmem:[#allocation1 + $0x8] sm:$0xff pattern:$0x75316420] }
  0x5f   : > { %439 = vmatpush.msra.mxu2 %v330_v48  ;;  %418 = vmatpush.msra.mxu1 %v363_v52  ;;  %v251_v5 = vsel %vm250_vm0, %v246_v2, -inf  ;;  %v258_v6 = vsel %vm250_vm0, %v247_v3, -inf  ;;  %v907_v51 = vmov 0.0  }
  0x60   : > { %459 = vmatpush.msra.mxu3 %v362_v49  ;;  %399 = vmatpush.msra.mxu0 %v329_v55  ;;  %v252_v8 = vrot.slane %v251_v5, 4  ;;  %v259_v9 = vrot.slane %v258_v6, 4  ;;  %v659_v52 = vsel %vm1086_vm2, 1.0, %v907_v51  ;;  %v658_v58 = vsel %vm1080_vm1, 1.0, %v907_v51 }
  0x61   : > { %440 = vmatpush.msra.mxu2 %v328_v53  ;;  %419 = vmatpush.msra.mxu1 %v361_v56  ;;  %v491_v57 = vrot.slane %v659_v52, 4 }
  0x62   : > { %460 = vmatpush.msra.mxu3 %v360_v54  ;;  %400 = vmatpush.msra.mxu0 %v327_v0  ;;  %v253_v13 = vmax.f32 %v251_v5, %v252_v8  ;;  %v260_v14 = vmax.f32 %v258_v6, %v259_v9 }
  0x63   : > { %441 = vmatpush.msra.mxu2 %v326_v60  ;;  %420 = vmatpush.msra.mxu1 %v359_v1 }
  0x64   : > { %461 = vmatpush.msra.mxu3 %v358_v61  ;;  %401 = vmatpush.msra.mxu0 %v325_v10  ;;  %v254_v17 = vrot.slane %v253_v13, 2  ;;  %v261_v18 = vrot.slane %v260_v14, 2 }
  0x65   : > { %442 = vmatpush.msra.mxu2 %v324_v62  ;;  %421 = vmatpush.msra.mxu1 %v357_v11  ;;  %v492_v62 = vsel %vm250_vm0, %v658_v58, %v491_v57 }
  0x66   : > { %462 = vmatpush.msra.mxu3 %v356_v63  ;;  %662 = vmatmul.msk.f32.vlgmr.msra.gmra.mxu2 %vm1080_vm1, %v906_v12  ;;  %v255_v19 = vmax.f32 %v253_v13, %v254_v17  ;;  %v262_v20 = vmax.f32 %v260_v14, %v261_v18 }
  0x67   : > { %663 = vmatmul.msk.f32.vlgmr.msra.gmra.mxu3 %vm1086_vm2, %v906_v12  ;;  %402 = vmatpush.msra.mxu0 %v323_v15 }
  0x68   : > { %422 = vmatpush.msra.mxu1 %v355_v16  ;;  %660 = vmatmul.msk.f32.vlgmr.msra.gmra.mxu0 %vm1080_vm1, %v906_v12  ;;  %v256_v21 = vrot.slane %v255_v19, 1  ;;  %v263_v22 = vrot.slane %v262_v20, 1 }
  0x69   : > { %661 = vmatmul.msk.f32.vlgmr.msra.gmra.mxu1 %vm1086_vm2, %v906_v12 }
  0x6a   : > { %v257_v23 = vmax.f32 %v255_v19, %v256_v21  ;;  %v264_v24 = vmax.f32 %v262_v20, %v263_v22 }
  0x6c   : > { %v267_v25 = vrot.slane %v264_v24, 4 }
  0x6e   : > { %v268_v26 = vsel %vm250_vm0, %v257_v23, %v267_v25 }
  0x6f   : > { %v270_v27 = vsub.f32 %v1077_v44, %v268_v26 }
  0x71   : > { %v271_v28 = vmul.f32 1.442695, %v270_v27  ;;  %v484_v27 = vsel %vm250_vm0, %v658_v58, 0.0 }
  0x73   : > { %737 = vpow2.f32 %v271_v28  ;;  %v485_v28 = vsel %vm250_vm0, %v659_v52, 0.0 }
  0x79   : > { %v738_v29 = vpop.eup %737 }
  0x7a   : > { %274 = vst [vmem:[#allocation1] ss:$2 sm:$0xff] %v738_v29 }
  0x81   : > { %v275_v30 = vld.sshfl [vmem:[#allocation1] sm:$0xff pattern:$0x75316420]  ;;  %v276_v31 = vld.sshfl [vmem:[#allocation1 + $0x8] sm:$0xff pattern:$0x75316420] }
  0x82   : > { %v279_v32 = vsel %vm250_vm0, %v275_v30, 0.0  ;;  %v286_v33 = vsel %vm250_vm0, %v276_v31, 0.0 }
  0x83   : > { %v280_v34 = vrot.slane %v279_v32, 4  ;;  %v287_v35 = vrot.slane %v286_v33, 4 }
  0x85   : > { %v281_v36 = vadd.f32 %v280_v34, %v279_v32  ;;  %v288_v37 = vadd.f32 %v287_v35, %v286_v33 }
  0x87   : > { %v282_v38 = vrot.slane %v281_v36, 2  ;;  %v289_v39 = vrot.slane %v288_v37, 2 }
  0x89   : > { %v283_v40 = vadd.f32 %v282_v38, %v281_v36  ;;  %v290_v41 = vadd.f32 %v289_v39, %v288_v37 }
  0x8b   : > { %v284_v42 = vrot.slane %v283_v40, 1  ;;  %v291_v43 = vrot.slane %v290_v41, 1 }
  0x8d   : > { %v285_v44 = vadd.f32 %v284_v42, %v283_v40  ;;  %v292_v45 = vadd.f32 %v291_v43, %v290_v41 }
  0x8f   : > { %v295_v46 = vrot.slane %v292_v45, 4 }
  0x91   : > { %v296_v47 = vsel %vm250_vm0, %v285_v44, %v295_v46 }
  0x92   : > { %739 = vrcp.f32 %v296_v47  ;;  %v309_v50 = vand.u32 2147483648, %v296_v47  ;;  %vm303_vm3 = vweird.f32 %v296_v47  ;;  %v307_v54 = vand.u32 2147483647, %v296_v47 }
  0x94   : > { %v310_v56 = vor.u32 1.1754944e-38, %v309_v50  ;;  %vm308_vm6 = vcmp.eq.f32.partialorder %v307_v54, 8.507059e+37 }
  0x98   : > { %v740_v48 = vpop.eup %739 }
  0x99   : > { %v299_v49 = vmul.f32 %v740_v48, %v296_v47  ;;  %vm304_vm4 = vweird.f32 %v740_v48 }
  0x9a   : > { %vm305_vm5 = vmor %vm303_vm3, %vm304_vm4 }
  0x9b   : > { %v300_v53 = vsub.f32 1.0, %v299_v49 }
  0x9d   : > { %v301_v55 = vmul.f32 %v740_v48, %v300_v53 }
  0x9f   : > { %v302_v59 = vadd.f32 %v740_v48, %v301_v55 }
  0xa1   : > { %v306_v60 = vsel %vm305_vm5, %v740_v48, %v302_v59 }
  0xa2   : > { %v311_v61 = vsel %vm308_vm6, %v310_v56, %v306_v60 }
  0xa3   : > { %v312_v63 = vmul.f32 %v738_v29, %v311_v61  ;;  %v486_v29 = vadd.f32 %v485_v28, %v484_v27 }
  0xa5   : > { %v494_v0 = vmul.f32 %v492_v62, %v312_v63  ;;  %v506_v1 = vmul.f32 %v312_v63, %v312_v63 }
  0xa7   : > { %496 = vst [vmem:[#allocation1] ss:$2 sm:$0xff] %v494_v0 }
  0xae   : > { %v497_v2 = vld.sshfl [vmem:[#allocation1] sm:$0xff pattern:$0x75316420]  ;;  %v498_v3 = vld.sshfl [vmem:[#allocation1 + $0x8] sm:$0xff pattern:$0x75316420] }
  0xaf   : > { %v501_v5 = vsel %vm250_vm0, %v497_v2, 0.0  ;;  %v502_v6 = vsel %vm250_vm0, %v498_v3, 0.0  ;;  %508 = vst [vmem:[#allocation1] ss:$2 sm:$0xff] %v506_v1 }
  0xb0   : > { %v503_v7 = vadd.f32 %v502_v6, %v501_v5 }
  0xb2   : > { %504 = vadd.xlane.f32.xlu1 %v503_v7 }
  0xb6   : > { %v509_v4 = vld.sshfl [vmem:[#allocation1] sm:$0xff pattern:$0x75316420]  ;;  %v510_v8 = vld.sshfl [vmem:[#allocation1 + $0x8] sm:$0xff pattern:$0x75316420] }
  0xb7   : > { %v513_v9 = vsel %vm250_vm0, %v509_v4, 0.0  ;;  %v514_v10 = vsel %vm250_vm0, %v510_v8, 0.0 }
  0xb8   : > { %v515_v11 = vadd.f32 %v514_v10, %v513_v9 }
  0xba   : > { %516 = vadd.xlane.f32.xlu1 %v515_v11 }
  0xe5   : > { %v404_v12 = vpop.f32.mrf.mxu0 }
  0xe6   : > { %v424_v13 = vpop.f32.mrf.mxu1 }
  0xe7   : > { %v425_v14 = vadd.f32 %v424_v13, %v404_v12 }
  0xe9   : > { %v444_v15 = vpop.f32.mrf.mxu2  ;;  %v467_v17 = vmul.f32 %v658_v58, %v425_v14 }
  0xea   : > { %v464_v16 = vpop.f32.mrf.mxu3 }
  0xeb   : > { %v465_v18 = vadd.f32 %v464_v16, %v444_v15  ;;  %vm469_vm7 = vcmp.eq.f32.partialorder %v467_v17, 5.0 }
  0xec   : > { %v471_v20 = vsel %vm469_vm7, 0.0, %v467_v17 }
  0xed   : > { %v468_v19 = vmul.f32 %v659_v52, %v465_v18  ;;  %vm473_vm9 = vcmp.ne.f32.partialorder %v471_v20, 0.0 }
  0xee   : > { %v664_v22 = vsel %vm473_vm9, 1.0, %v907_v51 }
  0xef   : > { %vm470_vm8 = vcmp.eq.f32.partialorder %v468_v19, 5.0  ;;  %v479_v23 = vsel %vm250_vm0, %v664_v22, 0.0 }
  0xf0   : > { %v472_v21 = vsel %vm470_vm8, 0.0, %v468_v19 }
  0xf1   : > { %vm474_vm10 = vcmp.ne.f32.partialorder %v472_v21, 0.0 }
  0xf2   : > { %v665_v24 = vsel %vm474_vm10, 1.0, %v907_v51 }
  0xf3   : > { %v480_v25 = vsel %vm250_vm0, %v665_v24, 0.0 }
  0xf4   : > { %v481_v26 = vadd.f32 %v480_v25, %v479_v23 }
  0xf6   : > { %482 = vadd.xlane.f32.xlu0 %v481_v26 }
  0xfe   : > { %487 = vadd.xlane.f32.xlu0 %v486_v29 }
 0x125   : > { %v505_v30 = vpop.xlane.xlu1 %504 }
 0x12d   : > { %v517_v33 = vpop.xlane.xlu1 %516 }
 0x169   : > { %v483_v31 = vpop.xlane.xlu0 %482 }
 0x171   : > { %v488_v32 = vpop.xlane.xlu0 %487 }
 0x172   : > { %v519_v34 = vsel %vm518_vm11, %v483_v31, %v488_v32 }
 0x173   : > { %v521_v35 = vsel %vm520_vm12, %v519_v34, %v505_v30 }
 0x174   : > { %v523_v36 = vsel %vm522_vm13, %v521_v35, %v517_v33 }
 0x175   : > { %525 = vst.msk [vmem:[%s241_s26] sm:$0xf] %vm524_vm14, %v523_v36 }
 0x176   : > { %858 = shalt.err (!%p855_p5)
}
 0x177   : > { %679 = dma.vmem_to_hbm [thread:$0]  (%p971_p6), %s540_s27, 64, %s542_s29, %s527_s16  }
 0x178 PF: > { %s553_s1 = sand.u32 1, %s889_s12   ;;  %p1169_p7 = scmp.ge.s32.totalorder %s901_s15, 2 }
 0x179   : > { %s554_s8 = scalar_lea.sflag [#allocation4], %s553_s1 }
 0x17a   : > { %p693_p9 = pnand %p1169_p7, %p980_p10 }
 0x17c   : > { %p694_p8 = pneg %p693_p9 }
 0x17e   : > { %884 = dma.done.wait (%p694_p8), %s554_s8, 64  }
 0x17f   : > { %886 = vsyncadd (%p694_p8), %s554_s8, 4294967232  ;;  %p17_p4 = scmp.ge.s32.totalorder %s953_s18, 4   ;;  %s1170_s12 = smov %s893_s13 }
 0x180   : > { %s1171_s13 = smov %s897_s14  ;;  %s1172_s14 = smov %s965_s21 }
 0x181   : > { %s1173_s15 = smov %s953_s18  ;;  %19 = sbr.rel (!%p17_p4) target bundleno = 9 (0x9), region = 93 }
 0x186   :  { %560 = vsyncpa [#allocation3], 1 }
 0x187   :  { %562 = vsyncpa [#allocation3 + $0x1], 1 }
 0x188   :  { %563 = vsyncpa [#allocation6], 1 }
 0x189   :  { %565 = vsyncpa [#allocation6 + $0x1], 1 }
 0x18a   :  { %566 = vsyncpa [#allocation4], 1 }
 0x18b   :  { %568 = vsyncpa [#allocation4 + $0x1], 1 }

</bundles_post_ra>
